<compile_context>
chip_gen: v6e
topology: v6e:2x2x1
jax: 0.10.0
libtpu: 0.0.40
codegen_flags: <defaults>
</compile_context>

<pallas_src>
import jax
import jax.numpy as jnp
from jax.experimental import pallas as pl
from jax.experimental.pallas import tpu as pltpu

_LANE = 128
_SUBLANE = 8


def _round_up(x, m):
    return ((x + m - 1) // m) * m


def _pad_to(arr, shape):
    pads = [(0, t - s) for s, t in zip(arr.shape, shape)]
    return jnp.pad(arr, pads)


def _make_lsm_kernel(n_layers, compute_dtype):
    """Whole MLP (split first matmul + matmul chain + ReLU) on one batch tile."""

    def kernel(feat_ref, mask_ref, *refs):
        # refs = (w0_feat, w0_mask, b0, w1, b1, ..., w_{L-1}, b_{L-1}, out_ref)
        out_ref = refs[-1]
        params = refs[:-1]

        # f32 -> bf16 cast inside the kernel (cheap VPU op, hides under DMA/MXU).
        feat = feat_ref[...].astype(compute_dtype)
        mask = mask_ref[...].astype(compute_dtype)

        # ---- layer 0: concat([feat, mask]) @ W0 == feat @ W0f + mask @ W0m ----
        w0f = params[0][...]
        w0m = params[1][...]
        b0 = params[2][...]  # f32
        x = (
            jnp.dot(feat, w0f, preferred_element_type=jnp.float32)
            + jnp.dot(mask, w0m, preferred_element_type=jnp.float32)
            + b0
        )
        x = jnp.maximum(x, 0.0)  # ReLU
        # TODO(synk): training-mode dropout not implemented (eval mode => identity).

        # ---- layers 1 .. n_layers-1 ----
        for i in range(1, n_layers):
            w = params[2 * i + 1][...]
            b = params[2 * i + 2][...]  # f32
            x = jnp.dot(x.astype(compute_dtype), w,
                        preferred_element_type=jnp.float32) + b
            if i != n_layers - 1:
                x = jnp.maximum(x, 0.0)  # ReLU (dropout = identity in eval)

        out_ref[...] = x.astype(out_ref.dtype)

    return kernel


def prepare_lsm_params(weights, biases, compute_dtype=jnp.bfloat16):
    """Pad/cast parameters ONCE (hoisted out of the per-call forward path).

    weights[i]: (in_features, out_features)   (transposed vs PyTorch's (out, in))
    biases[i] : (out_features,) or (1, out_features)
    """
    n_layers = len(weights)
    assert weights[0].shape[0] % 2 == 0
    input_size = weights[0].shape[0] // 2
    num_classes = weights[-1].shape[1]

    # Lane-dense (x128) output widths; K of layer 0 stays at input_size
    # (full-array block dim => no /128 constraint, and it avoids padded copies).
    layer_out = [_round_up(w.shape[1], _LANE) for w in weights]

    w0 = weights[0]
    flat_params = [
        _pad_to(w0[:input_size, :], (input_size, layer_out[0])).astype(compute_dtype),
        _pad_to(w0[input_size:, :], (input_size, layer_out[0])).astype(compute_dtype),
        _pad_to(jnp.reshape(biases[0], (1, -1)), (1, layer_out[0])).astype(jnp.float32),
    ]
    for i in range(1, n_layers):
        flat_params.append(
            _pad_to(weights[i], (layer_out[i - 1], layer_out[i])).astype(compute_dtype))
        flat_params.append(
            _pad_to(jnp.reshape(biases[i], (1, -1)), (1, layer_out[i])).astype(jnp.float32))

    meta = dict(
        n_layers=n_layers,
        input_size=input_size,
        num_classes=num_classes,
        layer_out=tuple(layer_out),
        compute_dtype=compute_dtype,
    )
    return flat_params, meta


def lsm_forward(features, missingness_mask, flat_params, meta, *,
                batch_tile=None, out_dtype=jnp.bfloat16):
    """Pallas-backed LSM forward (eval mode) on pre-prepared parameters."""
    n_layers = meta["n_layers"]
    input_size = meta["input_size"]
    num_classes = meta["num_classes"]
    layer_out = meta["layer_out"]
    compute_dtype = meta["compute_dtype"]
    c_pad = layer_out[-1]
    max_w = max(layer_out)

    batch = features.shape[0]
    assert features.shape == (batch, input_size)
    assert missingness_mask.shape == (batch, input_size)

    # Inputs stay f32 and unpadded in K; only the batch is (minimally) padded to
    # a sublane multiple when necessary so the block sublane constraint holds.
    features = features.astype(jnp.float32)
    missingness_mask = missingness_mask.astype(jnp.float32)
    batch_p = _round_up(batch, _SUBLANE)
    if batch_p != batch:
        features = jnp.pad(features, ((0, batch_p - batch), (0, 0)))
        missingness_mask = jnp.pad(missingness_mask, ((0, batch_p - batch), (0, 0)))

    cdt_sz = jnp.dtype(compute_dtype).itemsize
    out_sz = jnp.dtype(out_dtype).itemsize
    # Resident params are single-buffered (pl.Buffered(1)).
    param_bytes = sum(int(p.size) * p.dtype.itemsize for p in flat_params)

    # ---------- generation-aware VMEM budget ----------
    try:
        vmem_cap = int(pltpu.get_tpu_info().vmem_capacity_bytes)
    except Exception:
        vmem_cap = 64 << 20  # conservative default (v7x per-TC VMEM)
    usable = int(vmem_cap * 0.70)
    overhead = 2 << 20

    # Per-batch-row VMEM: double-buffered f32 input tiles, in-kernel bf16 casts,
    # f32 intermediates (widest layer, x2 live) + one bf16 copy, and the
    # double-buffered output tile.
    per_row = (2 * 2 * input_size * 4
               + 2 * input_size * cdt_sz
               + 2 * max_w * 4 + max_w * cdt_sz
               + 2 * c_pad * out_sz)

    min_needed = param_bytes + _SUBLANE * per_row + overhead
    if min_needed > int(vmem_cap * 0.9):
        # TODO(synk): weight-streaming schedule (grid over layers, or
        # pltpu.emit_pipeline tiling wide layers over K/N) for models whose
        # resident weights exceed the per-core VMEM envelope (hit first on v7x).
        raise ValueError(
            f"Padded LSM parameters ({param_bytes} B) do not fit the "
            f"VMEM-resident layout on this TPU (capacity {vmem_cap} B).")

    if batch_tile is None:
        budget = max(usable - param_bytes - overhead, 1 << 20)
        batch_tile = min(2048, max(budget // per_row, _SUBLANE), batch_p)
        # v7x-class chips (64 MiB VMEM) have 2 TensorCores: ensure >= 2 grid
        # tiles so the "parallel" batch axis feeds both cores.
        if vmem_cap <= (64 << 20) and batch_p >= 2 * _SUBLANE:
            batch_tile = min(batch_tile, _round_up(pl.cdiv(batch_p, 2), _SUBLANE))
    batch_tile = min(_round_up(int(batch_tile), _SUBLANE), batch_p)
    n_tiles = pl.cdiv(batch_p, batch_tile)

    # ---------- specs ----------
    act_spec = pl.BlockSpec((batch_tile, input_size), lambda i: (i, 0))
    out_spec = pl.BlockSpec((batch_tile, c_pad), lambda i: (i, 0))

    # ---------- advisory cost estimate ----------
    flops = 2 * batch_p * (
        2 * input_size * layer_out[0]
        + sum(layer_out[j - 1] * layer_out[j] for j in range(1, n_layers))
    )
    bytes_accessed = (2 * batch_p * input_size * 4      # f32 inputs
                      + param_bytes                      # resident params
                      + batch_p * c_pad * out_sz)        # output
    cost = pl.CostEstimate(flops=flops, transcendentals=0,
                           bytes_accessed=bytes_accessed)

    # ---------- VMEM limit (accurate bookkeeping, clamped to physical) ----------
    est_vmem = param_bytes + batch_tile * per_row + overhead
    vmem_limit = int(min(max(est_vmem, 16 << 20), int(vmem_cap * 0.9)))

    kernel = _make_lsm_kernel(n_layers, compute_dtype)

    def _build(single_buffer_params):
        if single_buffer_params:
            param_specs = [
                pl.BlockSpec(p.shape, lambda i: (0, 0),
                             pipeline_mode=pl.Buffered(1))
                for p in flat_params
            ]
        else:
            param_specs = [pl.BlockSpec(p.shape, lambda i: (0, 0))
                           for p in flat_params]
        return pl.pallas_call(
            kernel,
            out_shape=jax.ShapeDtypeStruct((batch_p, c_pad), out_dtype),
            grid=(n_tiles,),
            in_specs=[act_spec, act_spec] + param_specs,
            out_specs=out_spec,
            compiler_params=pltpu.CompilerParams(
                dimension_semantics=("parallel",),
                vmem_limit_bytes=vmem_limit,
            ),
            cost_estimate=cost,
        )

    try:
        # Constant-index resident params: single-buffered (halves param VMEM).
        out_padded = _build(True)(features, missingness_mask, *flat_params)
    except Exception:
        # Fallback if this Pallas build rejects pipeline_mode on BlockSpec.
        out_padded = _build(False)(features, missingness_mask, *flat_params)

    # Slice padded batch rows and padded class lanes back off.
    return out_padded[:batch, :num_classes]


def init_lsm_params(key, input_size, model_width, model_depth, num_classes):
    """Deterministic synthetic parameter init (matches get_layers shapes)."""
    dims = [2 * input_size] + [model_width] * model_depth + [num_classes]
    weights, biases = [], []
    for i in range(len(dims) - 1):
        key, wk, bk = jax.random.split(key, 3)
        fan_in = dims[i]
        scale = 1.0 / jnp.sqrt(jnp.float32(fan_in))
        w = jax.random.uniform(wk, (dims[i], dims[i + 1]), jnp.float32, -scale, scale)
        b = jax.random.uniform(bk, (1, dims[i + 1]), jnp.float32, -scale, scale)
        weights.append(w)
        biases.append(b)
    return weights, biases


def lsm_reference(features, missingness_mask, weights, biases,
                  compute_dtype=jnp.bfloat16):
    """Pure-JAX reference with matching numerics (bf16 operands, f32 accumulation)."""
    x = jnp.concatenate([features, missingness_mask], axis=1).astype(jnp.float32)
    n = len(weights)
    for i, (w, b) in enumerate(zip(weights, biases)):
        x = jnp.dot(x.astype(compute_dtype), w.astype(compute_dtype),
                    preferred_element_type=jnp.float32)
        x = x + jnp.reshape(b, (1, -1)).astype(jnp.float32)
        if i != n - 1:
            x = jnp.maximum(x, 0.0)
    return x


if __name__ == "__main__":
    # Small shapes consistent with the module's forward signature.
    batch = 8
    input_size = 16       # features and mask each (batch, input_size)
    model_width = 32
    model_depth = 3
    num_classes = 3

    key = jax.random.PRNGKey(0)
    key, kf, km, kp = jax.random.split(key, 4)

    features = jax.random.normal(kf, (batch, input_size), jnp.float32)
    missingness_mask = (
        jax.random.uniform(km, (batch, input_size)) > 0.5
    ).astype(jnp.float32)

    weights, biases = init_lsm_params(
        kp, input_size, model_width, model_depth, num_classes
    )

    # Parameters are padded/cast once, outside the per-call hot path.
    flat_params, meta = prepare_lsm_params(weights, biases)

    out = lsm_forward(features, missingness_mask, flat_params, meta)
    out = jax.block_until_ready(out)

    ref = lsm_reference(features, missingness_mask, weights, biases)
    assert out.shape == (batch, num_classes)
    assert jnp.allclose(out.astype(jnp.float32), ref, atol=3e-2, rtol=3e-2), (out, ref)

    print("KERNEL_OK")
</pallas_src>

<mosaic_0001>
module attributes {stable_mosaic.version = 11 : i64} {
  func.func @kernel(%arg0: i32, %arg1: memref<8x16xf32, #tpu.memory_space<vmem>>, %arg2: memref<8x16xf32, #tpu.memory_space<vmem>>, %arg3: memref<16x128xbf16, #tpu.memory_space<vmem>>, %arg4: memref<16x128xbf16, #tpu.memory_space<vmem>>, %arg5: memref<1x128xf32, #tpu.memory_space<vmem>>, %arg6: memref<128x128xbf16, #tpu.memory_space<vmem>>, %arg7: memref<1x128xf32, #tpu.memory_space<vmem>>, %arg8: memref<128x128xbf16, #tpu.memory_space<vmem>>, %arg9: memref<1x128xf32, #tpu.memory_space<vmem>>, %arg10: memref<128x128xbf16, #tpu.memory_space<vmem>>, %arg11: memref<1x128xf32, #tpu.memory_space<vmem>>, %arg12: memref<8x128xbf16, #tpu.memory_space<vmem>>) attributes {dimension_semantics = [#tpu.dimension_semantics<parallel>], iteration_bounds = array<i64: 1>, scalar_prefetch = 0 : i64, scratch_operands = 0 : i64, tpu.core_type = #tpu.core_type<tc>, window_params = [{transform_indices = @transform_0, window_bounds = array<i64: 8, 16>}, {transform_indices = @transform_1, window_bounds = array<i64: 8, 16>}, {pipeline_mode = #tpu.pipeline_mode<synchronous>, transform_indices = @transform_2, window_bounds = array<i64: 16, 128>}, {pipeline_mode = #tpu.pipeline_mode<synchronous>, transform_indices = @transform_3, window_bounds = array<i64: 16, 128>}, {pipeline_mode = #tpu.pipeline_mode<synchronous>, transform_indices = @transform_4, window_bounds = array<i64: 1, 128>}, {pipeline_mode = #tpu.pipeline_mode<synchronous>, transform_indices = @transform_5, window_bounds = array<i64: 128, 128>}, {pipeline_mode = #tpu.pipeline_mode<synchronous>, transform_indices = @transform_6, window_bounds = array<i64: 1, 128>}, {pipeline_mode = #tpu.pipeline_mode<synchronous>, transform_indices = @transform_7, window_bounds = array<i64: 128, 128>}, {pipeline_mode = #tpu.pipeline_mode<synchronous>, transform_indices = @transform_8, window_bounds = array<i64: 1, 128>}, {pipeline_mode = #tpu.pipeline_mode<synchronous>, transform_indices = @transform_9, window_bounds = array<i64: 128, 128>}, {pipeline_mode = #tpu.pipeline_mode<synchronous>, transform_indices = @transform_10, window_bounds = array<i64: 1, 128>}, {transform_indices = @transform_11, window_bounds = array<i64: 8, 128>}]} {
    %c0 = arith.constant 0 : index
    %c0_0 = arith.constant 0 : index
    %0 = vector.load %arg1[%c0, %c0_0] : memref<8x16xf32, #tpu.memory_space<vmem>>, vector<8x16xf32>
    %1 = arith.truncf %0 : vector<8x16xf32> to vector<8x16xbf16>
    %c0_1 = arith.constant 0 : index
    %c0_2 = arith.constant 0 : index
    %2 = vector.load %arg2[%c0_1, %c0_2] : memref<8x16xf32, #tpu.memory_space<vmem>>, vector<8x16xf32>
    %3 = arith.truncf %2 : vector<8x16xf32> to vector<8x16xbf16>
    %c0_3 = arith.constant 0 : index
    %c0_4 = arith.constant 0 : index
    %4 = vector.load %arg3[%c0_3, %c0_4] : memref<16x128xbf16, #tpu.memory_space<vmem>>, vector<16x128xbf16>
    %c0_5 = arith.constant 0 : index
    %c0_6 = arith.constant 0 : index
    %5 = vector.load %arg4[%c0_5, %c0_6] : memref<16x128xbf16, #tpu.memory_space<vmem>>, vector<16x128xbf16>
    %c0_7 = arith.constant 0 : index
    %c0_8 = arith.constant 0 : index
    %6 = vector.load %arg5[%c0_7, %c0_8] : memref<1x128xf32, #tpu.memory_space<vmem>>, vector<1x128xf32>
    %cst = arith.constant dense<0.000000e+00> : vector<8x128xf32>
    %7 = tpu.matmul %1, %4, %cst {dimension_numbers = #tpu.dot_dimension_numbers<[1], [0], [0], [1], [0, 0, 1, 1], [], []>} : vector<8x16xbf16>, vector<16x128xbf16>, vector<8x128xf32> -> vector<8x128xf32>
    %cst_9 = arith.constant dense<0.000000e+00> : vector<8x128xf32>
    %8 = tpu.matmul %3, %5, %cst_9 {dimension_numbers = #tpu.dot_dimension_numbers<[1], [0], [0], [1], [0, 0, 1, 1], [], []>} : vector<8x16xbf16>, vector<16x128xbf16>, vector<8x128xf32> -> vector<8x128xf32>
    %9 = arith.addf %7, %8 : vector<8x128xf32>
    %10 = vector.broadcast %6 : vector<1x128xf32> to vector<8x128xf32>
    %11 = arith.addf %9, %10 : vector<8x128xf32>
    %cst_10 = arith.constant 0.000000e+00 : f32
    %12 = vector.broadcast %cst_10 : f32 to vector<8x128xf32>
    %13 = arith.maximumf %11, %12 : vector<8x128xf32>
    %c0_11 = arith.constant 0 : index
    %c0_12 = arith.constant 0 : index
    %14 = vector.load %arg6[%c0_11, %c0_12] : memref<128x128xbf16, #tpu.memory_space<vmem>>, vector<128x128xbf16>
    %c0_13 = arith.constant 0 : index
    %c0_14 = arith.constant 0 : index
    %15 = vector.load %arg7[%c0_13, %c0_14] : memref<1x128xf32, #tpu.memory_space<vmem>>, vector<1x128xf32>
    %16 = arith.truncf %13 : vector<8x128xf32> to vector<8x128xbf16>
    %cst_15 = arith.constant dense<0.000000e+00> : vector<8x128xf32>
    %17 = tpu.matmul %16, %14, %cst_15 {dimension_numbers = #tpu.dot_dimension_numbers<[1], [0], [0], [1], [0, 0, 1, 1], [], []>} : vector<8x128xbf16>, vector<128x128xbf16>, vector<8x128xf32> -> vector<8x128xf32>
    %18 = vector.broadcast %15 : vector<1x128xf32> to vector<8x128xf32>
    %19 = arith.addf %17, %18 : vector<8x128xf32>
    %cst_16 = arith.constant 0.000000e+00 : f32
    %20 = vector.broadcast %cst_16 : f32 to vector<8x128xf32>
    %21 = arith.maximumf %19, %20 : vector<8x128xf32>
    %c0_17 = arith.constant 0 : index
    %c0_18 = arith.constant 0 : index
    %22 = vector.load %arg8[%c0_17, %c0_18] : memref<128x128xbf16, #tpu.memory_space<vmem>>, vector<128x128xbf16>
    %c0_19 = arith.constant 0 : index
    %c0_20 = arith.constant 0 : index
    %23 = vector.load %arg9[%c0_19, %c0_20] : memref<1x128xf32, #tpu.memory_space<vmem>>, vector<1x128xf32>
    %24 = arith.truncf %21 : vector<8x128xf32> to vector<8x128xbf16>
    %cst_21 = arith.constant dense<0.000000e+00> : vector<8x128xf32>
    %25 = tpu.matmul %24, %22, %cst_21 {dimension_numbers = #tpu.dot_dimension_numbers<[1], [0], [0], [1], [0, 0, 1, 1], [], []>} : vector<8x128xbf16>, vector<128x128xbf16>, vector<8x128xf32> -> vector<8x128xf32>
    %26 = vector.broadcast %23 : vector<1x128xf32> to vector<8x128xf32>
    %27 = arith.addf %25, %26 : vector<8x128xf32>
    %cst_22 = arith.constant 0.000000e+00 : f32
    %28 = vector.broadcast %cst_22 : f32 to vector<8x128xf32>
    %29 = arith.maximumf %27, %28 : vector<8x128xf32>
    %c0_23 = arith.constant 0 : index
    %c0_24 = arith.constant 0 : index
    %30 = vector.load %arg10[%c0_23, %c0_24] : memref<128x128xbf16, #tpu.memory_space<vmem>>, vector<128x128xbf16>
    %c0_25 = arith.constant 0 : index
    %c0_26 = arith.constant 0 : index
    %31 = vector.load %arg11[%c0_25, %c0_26] : memref<1x128xf32, #tpu.memory_space<vmem>>, vector<1x128xf32>
    %32 = arith.truncf %29 : vector<8x128xf32> to vector<8x128xbf16>
    %cst_27 = arith.constant dense<0.000000e+00> : vector<8x128xf32>
    %33 = tpu.matmul %32, %30, %cst_27 {dimension_numbers = #tpu.dot_dimension_numbers<[1], [0], [0], [1], [0, 0, 1, 1], [], []>} : vector<8x128xbf16>, vector<128x128xbf16>, vector<8x128xf32> -> vector<8x128xf32>
    %34 = vector.broadcast %31 : vector<1x128xf32> to vector<8x128xf32>
    %35 = arith.addf %33, %34 : vector<8x128xf32>
    %36 = arith.truncf %35 : vector<8x128xf32> to vector<8x128xbf16>
    %c0_28 = arith.constant 0 : index
    %c0_29 = arith.constant 0 : index
    %37 = vector.load %arg12[%c0_28, %c0_29] : memref<8x128xbf16, #tpu.memory_space<vmem>>, vector<8x128xbf16>
    tpu.vector_store %arg12[%c0_28, %c0_29], %36 {strides = array<i32>} : memref<8x128xbf16, #tpu.memory_space<vmem>>, vector<8x128xbf16>,
    return
  }
  func.func @transform_0(%arg0: i32) -> (i32, i32) {
    %c0_i32 = arith.constant 0 : i32
    %c0_i32_0 = arith.constant 0 : i32
    return %arg0, %c0_i32 : i32, i32
  }
  func.func @transform_1(%arg0: i32) -> (i32, i32) {
    %c0_i32 = arith.constant 0 : i32
    %c0_i32_0 = arith.constant 0 : i32
    return %arg0, %c0_i32 : i32, i32
  }
  func.func @transform_2(%arg0: i32) -> (i32, i32) {
    %c0_i32 = arith.constant 0 : i32
    %c0_i32_0 = arith.constant 0 : i32
    %c0_i32_1 = arith.constant 0 : i32
    return %c0_i32, %c0_i32_0 : i32, i32
  }
  func.func @transform_3(%arg0: i32) -> (i32, i32) {
    %c0_i32 = arith.constant 0 : i32
    %c0_i32_0 = arith.constant 0 : i32
    %c0_i32_1 = arith.constant 0 : i32
    return %c0_i32, %c0_i32_0 : i32, i32
  }
  func.func @transform_4(%arg0: i32) -> (i32, i32) {
    %c0_i32 = arith.constant 0 : i32
    %c0_i32_0 = arith.constant 0 : i32
    %c0_i32_1 = arith.constant 0 : i32
    return %c0_i32, %c0_i32_0 : i32, i32
  }
  func.func @transform_5(%arg0: i32) -> (i32, i32) {
    %c0_i32 = arith.constant 0 : i32
    %c0_i32_0 = arith.constant 0 : i32
    %c0_i32_1 = arith.constant 0 : i32
    return %c0_i32, %c0_i32_0 : i32, i32
  }
  func.func @transform_6(%arg0: i32) -> (i32, i32) {
    %c0_i32 = arith.constant 0 : i32
    %c0_i32_0 = arith.constant 0 : i32
    %c0_i32_1 = arith.constant 0 : i32
    return %c0_i32, %c0_i32_0 : i32, i32
  }
  func.func @transform_7(%arg0: i32) -> (i32, i32) {
    %c0_i32 = arith.constant 0 : i32
    %c0_i32_0 = arith.constant 0 : i32
    %c0_i32_1 = arith.constant 0 : i32
    return %c0_i32, %c0_i32_0 : i32, i32
  }
  func.func @transform_8(%arg0: i32) -> (i32, i32) {
    %c0_i32 = arith.constant 0 : i32
    %c0_i32_0 = arith.constant 0 : i32
    %c0_i32_1 = arith.constant 0 : i32
    return %c0_i32, %c0_i32_0 : i32, i32
  }
  func.func @transform_9(%arg0: i32) -> (i32, i32) {
    %c0_i32 = arith.constant 0 : i32
    %c0_i32_0 = arith.constant 0 : i32
    %c0_i32_1 = arith.constant 0 : i32
    return %c0_i32, %c0_i32_0 : i32, i32
  }
  func.func @transform_10(%arg0: i32) -> (i32, i32) {
    %c0_i32 = arith.constant 0 : i32
    %c0_i32_0 = arith.constant 0 : i32
    %c0_i32_1 = arith.constant 0 : i32
    return %c0_i32, %c0_i32_0 : i32, i32
  }
  func.func @transform_11(%arg0: i32) -> (i32, i32) {
    %c0_i32 = arith.constant 0 : i32
    %c0_i32_0 = arith.constant 0 : i32
    return %arg0, %c0_i32 : i32, i32
  }
}

module attributes {stable_mosaic.version = 11 : i64} {
  func.func @kernel(%arg0: i32, %arg1: memref<8x16xf32, #tpu.memory_space<vmem>>, %arg2: memref<8x16xf32, #tpu.memory_space<vmem>>, %arg3: memref<16x128xbf16, #tpu.memory_space<vmem>>, %arg4: memref<16x128xbf16, #tpu.memory_space<vmem>>, %arg5: memref<1x128xf32, #tpu.memory_space<vmem>>, %arg6: memref<128x128xbf16, #tpu.memory_space<vmem>>, %arg7: memref<1x128xf32, #tpu.memory_space<vmem>>, %arg8: memref<128x128xbf16, #tpu.memory_space<vmem>>, %arg9: memref<1x128xf32, #tpu.memory_space<vmem>>, %arg10: memref<128x128xbf16, #tpu.memory_space<vmem>>, %arg11: memref<1x128xf32, #tpu.memory_space<vmem>>, %arg12: memref<8x128xbf16, #tpu.memory_space<vmem>>) attributes {dimension_semantics = [#tpu.dimension_semantics<parallel>], iteration_bounds = array<i64: 1>, scalar_prefetch = 0 : i64, scratch_operands = 0 : i64, tpu.core_type = #tpu.core_type<tc>, window_params = [{transform_indices = @transform_0, window_bounds = array<i64: 8, 16>}, {transform_indices = @transform_1, window_bounds = array<i64: 8, 16>}, {pipeline_mode = #tpu.pipeline_mode<synchronous>, transform_indices = @transform_2, window_bounds = array<i64: 16, 128>}, {pipeline_mode = #tpu.pipeline_mode<synchronous>, transform_indices = @transform_3, window_bounds = array<i64: 16, 128>}, {pipeline_mode = #tpu.pipeline_mode<synchronous>, transform_indices = @transform_4, window_bounds = array<i64: 1, 128>}, {pipeline_mode = #tpu.pipeline_mode<synchronous>, transform_indices = @transform_5, window_bounds = array<i64: 128, 128>}, {pipeline_mode = #tpu.pipeline_mode<synchronous>, transform_indices = @transform_6, window_bounds = array<i64: 1, 128>}, {pipeline_mode = #tpu.pipeline_mode<synchronous>, transform_indices = @transform_7, window_bounds = array<i64: 128, 128>}, {pipeline_mode = #tpu.pipeline_mode<synchronous>, transform_indices = @transform_8, window_bounds = array<i64: 1, 128>}, {pipeline_mode = #tpu.pipeline_mode<synchronous>, transform_indices = @transform_9, window_bounds = array<i64: 128, 128>}, {pipeline_mode = #tpu.pipeline_mode<synchronous>, transform_indices = @transform_10, window_bounds = array<i64: 1, 128>}, {transform_indices = @transform_11, window_bounds = array<i64: 8, 128>}]} {
    %c0 = arith.constant 0 : index
    %c0_0 = arith.constant 0 : index
    %0 = vector.load %arg1[%c0, %c0_0] : memref<8x16xf32, #tpu.memory_space<vmem>>, vector<8x16xf32>
    %1 = arith.truncf %0 : vector<8x16xf32> to vector<8x16xbf16>
    %c0_1 = arith.constant 0 : index
    %c0_2 = arith.constant 0 : index
    %2 = vector.load %arg2[%c0_1, %c0_2] : memref<8x16xf32, #tpu.memory_space<vmem>>, vector<8x16xf32>
    %3 = arith.truncf %2 : vector<8x16xf32> to vector<8x16xbf16>
    %c0_3 = arith.constant 0 : index
    %c0_4 = arith.constant 0 : index
    %4 = vector.load %arg3[%c0_3, %c0_4] : memref<16x128xbf16, #tpu.memory_space<vmem>>, vector<16x128xbf16>
    %c0_5 = arith.constant 0 : index
    %c0_6 = arith.constant 0 : index
    %5 = vector.load %arg4[%c0_5, %c0_6] : memref<16x128xbf16, #tpu.memory_space<vmem>>, vector<16x128xbf16>
    %c0_7 = arith.constant 0 : index
    %c0_8 = arith.constant 0 : index
    %6 = vector.load %arg5[%c0_7, %c0_8] : memref<1x128xf32, #tpu.memory_space<vmem>>, vector<1x128xf32>
    %cst = arith.constant dense<0.000000e+00> : vector<8x128xf32>
    %7 = tpu.matmul %1, %4, %cst {dimension_numbers = #tpu.dot_dimension_numbers<[1], [0], [0], [1], [0, 0, 1, 1], [], []>} : vector<8x16xbf16>, vector<16x128xbf16>, vector<8x128xf32> -> vector<8x128xf32>
    %cst_9 = arith.constant dense<0.000000e+00> : vector<8x128xf32>
    %8 = tpu.matmul %3, %5, %cst_9 {dimension_numbers = #tpu.dot_dimension_numbers<[1], [0], [0], [1], [0, 0, 1, 1], [], []>} : vector<8x16xbf16>, vector<16x128xbf16>, vector<8x128xf32> -> vector<8x128xf32>
    %9 = arith.addf %7, %8 : vector<8x128xf32>
    %10 = vector.broadcast %6 : vector<1x128xf32> to vector<8x128xf32>
    %11 = arith.addf %9, %10 : vector<8x128xf32>
    %cst_10 = arith.constant 0.000000e+00 : f32
    %12 = vector.broadcast %cst_10 : f32 to vector<8x128xf32>
    %13 = arith.maximumf %11, %12 : vector<8x128xf32>
    %c0_11 = arith.constant 0 : index
    %c0_12 = arith.constant 0 : index
    %14 = vector.load %arg6[%c0_11, %c0_12] : memref<128x128xbf16, #tpu.memory_space<vmem>>, vector<128x128xbf16>
    %c0_13 = arith.constant 0 : index
    %c0_14 = arith.constant 0 : index
    %15 = vector.load %arg7[%c0_13, %c0_14] : memref<1x128xf32, #tpu.memory_space<vmem>>, vector<1x128xf32>
    %16 = arith.truncf %13 : vector<8x128xf32> to vector<8x128xbf16>
    %cst_15 = arith.constant dense<0.000000e+00> : vector<8x128xf32>
    %17 = tpu.matmul %16, %14, %cst_15 {dimension_numbers = #tpu.dot_dimension_numbers<[1], [0], [0], [1], [0, 0, 1, 1], [], []>} : vector<8x128xbf16>, vector<128x128xbf16>, vector<8x128xf32> -> vector<8x128xf32>
    %18 = vector.broadcast %15 : vector<1x128xf32> to vector<8x128xf32>
    %19 = arith.addf %17, %18 : vector<8x128xf32>
    %cst_16 = arith.constant 0.000000e+00 : f32
    %20 = vector.broadcast %cst_16 : f32 to vector<8x128xf32>
    %21 = arith.maximumf %19, %20 : vector<8x128xf32>
    %c0_17 = arith.constant 0 : index
    %c0_18 = arith.constant 0 : index
    %22 = vector.load %arg8[%c0_17, %c0_18] : memref<128x128xbf16, #tpu.memory_space<vmem>>, vector<128x128xbf16>
    %c0_19 = arith.constant 0 : index
    %c0_20 = arith.constant 0 : index
    %23 = vector.load %arg9[%c0_19, %c0_20] : memref<1x128xf32, #tpu.memory_space<vmem>>, vector<1x128xf32>
    %24 = arith.truncf %21 : vector<8x128xf32> to vector<8x128xbf16>
    %cst_21 = arith.constant dense<0.000000e+00> : vector<8x128xf32>
    %25 = tpu.matmul %24, %22, %cst_21 {dimension_numbers = #tpu.dot_dimension_numbers<[1], [0], [0], [1], [0, 0, 1, 1], [], []>} : vector<8x128xbf16>, vector<128x128xbf16>, vector<8x128xf32> -> vector<8x128xf32>
    %26 = vector.broadcast %23 : vector<1x128xf32> to vector<8x128xf32>
    %27 = arith.addf %25, %26 : vector<8x128xf32>
    %cst_22 = arith.constant 0.000000e+00 : f32
    %28 = vector.broadcast %cst_22 : f32 to vector<8x128xf32>
    %29 = arith.maximumf %27, %28 : vector<8x128xf32>
    %c0_23 = arith.constant 0 : index
    %c0_24 = arith.constant 0 : index
    %30 = vector.load %arg10[%c0_23, %c0_24] : memref<128x128xbf16, #tpu.memory_space<vmem>>, vector<128x128xbf16>
    %c0_25 = arith.constant 0 : index
    %c0_26 = arith.constant 0 : index
    %31 = vector.load %arg11[%c0_25, %c0_26] : memref<1x128xf32, #tpu.memory_space<vmem>>, vector<1x128xf32>
    %32 = arith.truncf %29 : vector<8x128xf32> to vector<8x128xbf16>
    %cst_27 = arith.constant dense<0.000000e+00> : vector<8x128xf32>
    %33 = tpu.matmul %32, %30, %cst_27 {dimension_numbers = #tpu.dot_dimension_numbers<[1], [0], [0], [1], [0, 0, 1, 1], [], []>} : vector<8x128xbf16>, vector<128x128xbf16>, vector<8x128xf32> -> vector<8x128xf32>
    %34 = vector.broadcast %31 : vector<1x128xf32> to vector<8x128xf32>
    %35 = arith.addf %33, %34 : vector<8x128xf32>
    %36 = arith.truncf %35 : vector<8x128xf32> to vector<8x128xbf16>
    %c0_28 = arith.constant 0 : index
    %c0_29 = arith.constant 0 : index
    %37 = vector.load %arg12[%c0_28, %c0_29] : memref<8x128xbf16, #tpu.memory_space<vmem>>, vector<8x128xbf16>
    tpu.vector_store %arg12[%c0_28, %c0_29], %36 {strides = array<i32>} : memref<8x128xbf16, #tpu.memory_space<vmem>>, vector<8x128xbf16>,
    return
  }
  func.func @transform_0(%arg0: i32) -> (i32, i32) {
    %c0_i32 = arith.constant 0 : i32
    %c0_i32_0 = arith.constant 0 : i32
    return %arg0, %c0_i32 : i32, i32
  }
  func.func @transform_1(%arg0: i32) -> (i32, i32) {
    %c0_i32 = arith.constant 0 : i32
    %c0_i32_0 = arith.constant 0 : i32
    return %arg0, %c0_i32 : i32, i32
  }
  func.func @transform_2(%arg0: i32) -> (i32, i32) {
    %c0_i32 = arith.constant 0 : i32
    %c0_i32_0 = arith.constant 0 : i32
    %c0_i32_1 = arith.constant 0 : i32
    return %c0_i32, %c0_i32_0 : i32, i32
  }
  func.func @transform_3(%arg0: i32) -> (i32, i32) {
    %c0_i32 = arith.constant 0 : i32
    %c0_i32_0 = arith.constant 0 : i32
    %c0_i32_1 = arith.constant 0 : i32
    return %c0_i32, %c0_i32_0 : i32, i32
  }
  func.func @transform_4(%arg0: i32) -> (i32, i32) {
    %c0_i32 = arith.constant 0 : i32
    %c0_i32_0 = arith.constant 0 : i32
    %c0_i32_1 = arith.constant 0 : i32
    return %c0_i32, %c0_i32_0 : i32, i32
  }
  func.func @transform_5(%arg0: i32) -> (i32, i32) {
    %c0_i32 = arith.constant 0 : i32
    %c0_i32_0 = arith.constant 0 : i32
    %c0_i32_1 = arith.constant 0 : i32
    return %c0_i32, %c0_i32_0 : i32, i32
  }
  func.func @transform_6(%arg0: i32) -> (i32, i32) {
    %c0_i32 = arith.constant 0 : i32
    %c0_i32_0 = arith.constant 0 : i32
    %c0_i32_1 = arith.constant 0 : i32
    return %c0_i32, %c0_i32_0 : i32, i32
  }
  func.func @transform_7(%arg0: i32) -> (i32, i32) {
    %c0_i32 = arith.constant 0 : i32
    %c0_i32_0 = arith.constant 0 : i32
    %c0_i32_1 = arith.constant 0 : i32
    return %c0_i32, %c0_i32_0 : i32, i32
  }
  func.func @transform_8(%arg0: i32) -> (i32, i32) {
    %c0_i32 = arith.constant 0 : i32
    %c0_i32_0 = arith.constant 0 : i32
    %c0_i32_1 = arith.constant 0 : i32
    return %c0_i32, %c0_i32_0 : i32, i32
  }
  func.func @transform_9(%arg0: i32) -> (i32, i32) {
    %c0_i32 = arith.constant 0 : i32
    %c0_i32_0 = arith.constant 0 : i32
    %c0_i32_1 = arith.constant 0 : i32
    return %c0_i32, %c0_i32_0 : i32, i32
  }
  func.func @transform_10(%arg0: i32) -> (i32, i32) {
    %c0_i32 = arith.constant 0 : i32
    %c0_i32_0 = arith.constant 0 : i32
    %c0_i32_1 = arith.constant 0 : i32
    return %c0_i32, %c0_i32_0 : i32, i32
  }
  func.func @transform_11(%arg0: i32) -> (i32, i32) {
    %c0_i32 = arith.constant 0 : i32
    %c0_i32_0 = arith.constant 0 : i32
    return %arg0, %c0_i32 : i32, i32
  }
}

</mosaic_0001>

<bundles_post_ra>
// kernel: tpu_custom_call.1
= control target key start
LH: loop header
LB: loop body
LE: loop exit
PB: predicated region body
PF: predicated region fallthrough
CT: control target
= control target key end

     0   :  { %16 = vsyncpa [#allocation3], 0  ;;  %s1109_s0 = inlined_call_operand.hbm [shape: f32[8,16], index: 0, kind: input, shape index: {}]   ;;  %s1110_s1 = inlined_call_operand.hbm [shape: f32[8,16], index: 1, kind: input, shape index: {}]   ;;  %s1111_s2 = inlined_call_operand.hbm [shape: bf16[16,128], index: 2, kind: input, shape index: {}]   ;;  %s1112_s3 = inlined_call_operand.hbm [shape: bf16[16,128], index: 3, kind: input, shape index: {}]   ;;  %s1113_s4 = inlined_call_operand.vmem [shape: f32[1,128], index: 4, kind: input, shape index: {}]   ;;  %s1114_s5 = inlined_call_operand.hbm [shape: bf16[128,128], index: 5, kind: input, shape index: {}]   ;;  %s1115_s6 = inlined_call_operand.vmem [shape: f32[1,128], index: 6, kind: input, shape index: {}]   ;;  %s1116_s7 = inlined_call_operand.hbm [shape: bf16[128,128], index: 7, kind: input, shape index: {}]   ;;  %s1117_s8 = inlined_call_operand.vmem [shape: f32[1,128], index: 8, kind: input, shape index: {}]   ;;  %s1118_s9 = inlined_call_operand.hbm [shape: bf16[128,128], index: 9, kind: input, shape index: {}]   ;;  %s1119_s10 = inlined_call_operand.vmem [shape: f32[1,128], index: 10, kind: input, shape index: {}]   ;;  %s1120_s11 = inlined_call_operand.hbm [shape: bf16[8,128], index: 11, kind: output, shape index: {}]  }
   0x1   :  { %17 = vsyncpa [#allocation6], 0 }
   0x2   :  { %18 = vsyncpa [#allocation9], 0 }
   0x3   :  { %19 = vsyncpa [#allocation12], 0 }
   0x4   :  { %20 = vsyncpa [#allocation4], 0  ;;  %s948_s17 = smov [#allocation5]  }
   0x5   :  { %s37_s18 = sshll.u32 %s948_s17, 4  ;;  %s38_s18 = int_to_ptr.vmem [resolvable:$true] %s37_s18 }
   0x6   :  { %s786_s19 = scalar_lea.vmem %s38_s18, 128  ;;  %p791_p1 = scmp.lt.s32.totalorder %s38_s18, %s38_s18 }
   0x7   :  { %p787_p0 = scmp.ne.s32.totalorder %s38_s18, %s786_s19  ;;  %p792_p2 = scmp.lt.s32.totalorder %s786_s19, %s786_s19 }
   0x9   :  { %p793_p3 = por %p792_p2, %p791_p1 }
   0xb   :  { %p794_p4 = pnand %p793_p3, %p787_p0 }
   0xd   :  { %797 = shalt.err (!%p794_p4)
}
   0xe   :  { %40 = dma.hbm_to_vmem [thread:$0]  %s1110_s1, 128, %s38_s18, [#allocation6]  }
   0xf   :  { %s949_s22 = smov [#allocation8]   ;;  %s950_s24 = smov [#allocation11]  }
  0x10   :  { %s58_s23 = sshll.u32 %s949_s22, 4  ;;  %s86_s25 = sshll.u32 %s950_s24, 4  ;;  %s59_s23 = int_to_ptr.vmem [resolvable:$true] %s58_s23  ;;  %s87_s25 = int_to_ptr.vmem [resolvable:$true] %s86_s25 }
  0x11   :  { %s806_s26 = scalar_lea.vmem %s59_s23, 128  ;;  %p811_p6 = scmp.lt.s32.totalorder %s59_s23, %s59_s23 }
  0x12   :  { %p807_p5 = scmp.ne.s32.totalorder %s59_s23, %s806_s26  ;;  %p812_p7 = scmp.lt.s32.totalorder %s806_s26, %s806_s26 }
  0x14   :  { %p813_p8 = por %p812_p7, %p811_p6 }
  0x16   :  { %p814_p9 = pnand %p813_p8, %p807_p5 }
  0x18   :  { %817 = shalt.err (!%p814_p9)
}
  0x19   :  { %s951_s27 = smov 64   ;;  %s952_s28 = smov 4  }
  0x1a   :  { %64 = dma.hbm_to_vmem [thread:$0]  %s1112_s3, 128, %s59_s23, [#allocation9], %s951_s27, %s951_s27, %s952_s28  }
  0x1b   :  { %s826_s1 = scalar_lea.vmem %s87_s25, 1024  ;;  %p831_p11 = scmp.lt.s32.totalorder %s87_s25, %s87_s25 }
  0x1c   :  { %p827_p10 = scmp.ne.s32.totalorder %s87_s25, %s826_s1  ;;  %p832_p12 = scmp.lt.s32.totalorder %s826_s1, %s826_s1 }
  0x1e   :  { %p833_p13 = por %p832_p12, %p831_p11 }
  0x20   :  { %p834_p0 = pnand %p833_p13, %p827_p10 }
  0x22   :  { %837 = shalt.err (!%p834_p0)
}
  0x23   :  { %92 = dma.hbm_to_vmem [thread:$0]  %s1116_s7, 1024, %s87_s25, [#allocation12], %s951_s27, %s951_s27, %s952_s28  }
  0x24   :  { %s953_s14 = smov [#allocation2]   ;;  %s954_s16 = smov [#allocation7]  }
  0x25   :  { %s27_s15 = sshll.u32 %s953_s14, 4  ;;  %s46_s3 = sshll.u32 %s954_s16, 4  ;;  %s28_s15 = int_to_ptr.vmem [resolvable:$true] %s27_s15  ;;  %s47_s3 = int_to_ptr.vmem [resolvable:$true] %s46_s3 }
  0x26   :  { %s846_s17 = scalar_lea.vmem %s28_s15, 128  ;;  %p851_p2 = scmp.lt.s32.totalorder %s28_s15, %s28_s15 }
  0x27   :  { %p847_p1 = scmp.ne.s32.totalorder %s28_s15, %s846_s17  ;;  %p852_p3 = scmp.lt.s32.totalorder %s846_s17, %s846_s17 }
  0x29   :  { %p853_p4 = por %p852_p3, %p851_p2 }
  0x2b   :  { %p854_p5 = pnand %p853_p4, %p847_p1 }
  0x2d   :  { %857 = shalt.err (!%p854_p5)
}
  0x2e   :  { %30 = dma.hbm_to_vmem [thread:$0]  %s1109_s0, 128, %s28_s15, [#allocation3]  }
  0x2f   :  { %s866_s20 = scalar_lea.vmem %s47_s3, 128  ;;  %p871_p7 = scmp.lt.s32.totalorder %s47_s3, %s47_s3 }
  0x30   :  { %p867_p6 = scmp.ne.s32.totalorder %s47_s3, %s866_s20  ;;  %p872_p8 = scmp.lt.s32.totalorder %s866_s20, %s866_s20 }
  0x32   :  { %p873_p9 = por %p872_p8, %p871_p7 }
  0x34   :  { %p874_p10 = pnand %p873_p9, %p867_p6 }
  0x36   :  { %877 = shalt.err (!%p874_p10)
}
  0x37   :  { %52 = dma.hbm_to_vmem [thread:$0]  %s1111_s2, 128, %s47_s3, [#allocation6], %s951_s27, %s951_s27, %s952_s28  }
  0x38   :  { %s955_s22 = smov [#allocation10]   ;;  %s956_s24 = smov [#allocation13]  }
  0x39   :  { %s72_s23 = sshll.u32 %s955_s22, 4  ;;  %s100_s0 = sshll.u32 %s956_s24, 4  ;;  %s73_s23 = int_to_ptr.vmem [resolvable:$true] %s72_s23  ;;  %s101_s0 = int_to_ptr.vmem [resolvable:$true] %s100_s0 }
  0x3a   :  { %s886_s25 = scalar_lea.vmem %s73_s23, 1024  ;;  %p891_p12 = scmp.lt.s32.totalorder %s73_s23, %s73_s23 }
  0x3b   :  { %p887_p11 = scmp.ne.s32.totalorder %s73_s23, %s886_s25  ;;  %p892_p13 = scmp.lt.s32.totalorder %s886_s25, %s886_s25 }
  0x3d   :  { %p893_p0 = por %p892_p13, %p891_p12 }
  0x3f   :  { %p894_p1 = pnand %p893_p0, %p887_p11 }
  0x41   :  { %897 = shalt.err (!%p894_p1)
}
  0x42   :  { %78 = dma.hbm_to_vmem [thread:$0]  %s1114_s5, 1024, %s73_s23, [#allocation9], %s951_s27, %s951_s27, %s952_s28  }
  0x43   :  { %s906_s2 = scalar_lea.vmem %s101_s0, 1024  ;;  %p911_p3 = scmp.lt.s32.totalorder %s101_s0, %s101_s0 }
  0x44   :  { %p907_p2 = scmp.ne.s32.totalorder %s101_s0, %s906_s2  ;;  %p912_p4 = scmp.lt.s32.totalorder %s906_s2, %s906_s2 }
  0x46   :  { %p913_p5 = por %p912_p4, %p911_p3 }
  0x48   :  { %p914_p6 = pnand %p913_p5, %p907_p2 }
  0x4a   :  { %917 = shalt.err (!%p914_p6)
}
  0x4b   :  { %106 = dma.hbm_to_vmem [thread:$0]  %s1118_s9, 1024, %s101_s0, [#allocation12], %s951_s27, %s951_s27, %s952_s28  }
  0x4c   :  { %938 = dma.done.wait [#allocation3], 128  }
  0x4d   :  { %939 = vsyncadd [#allocation3], 4294967168 }
  0x4e   :  { %940 = dma.done.wait [#allocation6], 256  }
  0x4f   :  { %941 = vsyncadd [#allocation6], 4294967040 }
  0x50   :  { %942 = dma.done.wait [#allocation9], 1152  }
  0x51   :  { %943 = vsyncadd [#allocation9], 4294966144 }
  0x52   :  { %944 = dma.done.wait [#allocation12], 2048  }
  0x53   :  { %945 = vsyncadd [#allocation12], 4294965248  ;;  %v957_v0 = vmov 0.0   ;;  %vm958_vm0 = vmmov 0   ;;  %v752_v1 = vld [vmem:[#allocation8] sm:$0xff]   ;;  %v133_v2 = vld [vmem:[#allocation5] sm:$0xff] }
  0x54   :  { %668 = vmatprep.subr.bf16.mxu1 %v957_v0  ;;  %670 = vmatprep.mubr.msk.bf16.mxu1 %vm958_vm0, %v957_v0  ;;  %v134_v3 = vpack.c.bf16 %v133_v2, %v133_v2  ;;  %vm146_vm1 = vcmask 130048   ;;  %v753_v4 = vld [vmem:[#allocation7] sm:$0xff]   ;;  %v754_v5 = vld [vmem:[#allocation10 + $0x38] sm:$0xff]   ;;  %v131_v7 = vld [vmem:[#allocation2] sm:$0xff]  ;;  %s959_s14 = smov [#allocation14]  }
  0x55   :  { %680 = vmatprep.subr.bf16.mxu0 %v957_v0  ;;  %696 = vmatprep.mubr.msk.bf16.mxu0 %vm958_vm0, %v957_v0  ;;  %v755_v6 = vld [vmem:[#allocation10 + $0x30] sm:$0xff]   ;;  %v756_v8 = vld [vmem:[#allocation10 + $0x28] sm:$0xff]   ;;  %v132_v9 = vpack.c.bf16 %v131_v7, %v131_v7  ;;  %v757_v10 = vld [vmem:[#allocation10 + $0x20] sm:$0xff]   ;;  %s593_s15 = sshll.u32 %s959_s14, 4  ;;  %s594_s15 = int_to_ptr.vmem [resolvable:$true] %s593_s15 }
  0x56   :  { %669 = vmatpush3.bf16.msra.mxu1 %v752_v1  ;;  %681 = vmatpush3.bf16.msra.mxu0 %v754_v5  ;;  %v758_v11 = vld [vmem:[#allocation10 + $0x18] sm:$0xff]   ;;  %v759_v12 = vld [vmem:[#allocation10 + $0x10] sm:$0xff]   ;;  %v760_v13 = vld [vmem:[#allocation10 + $0x8] sm:$0xff]   ;;  %p923_p8 = scmp.lt.s32.totalorder %s594_s15, %s594_s15 }
  0x57   :  { %674 = vmatprep.subr.bf16.mxu1 %v957_v0  ;;  %682 = vmatprep.subr.bf16.mxu0 %v957_v0  ;;  %v761_v14 = vld [vmem:[#allocation10] sm:$0xff]   ;;  %v762_v15 = vld [vmem:[#allocation11 + $0x38] sm:$0xff]   ;;  %v763_v16 = vld [vmem:[#allocation11 + $0x30] sm:$0xff]  }
  0x58   :  { %v764_v17 = vld [vmem:[#allocation11 + $0x28] sm:$0xff]   ;;  %v765_v18 = vld [vmem:[#allocation11 + $0x20] sm:$0xff]   ;;  %v766_v19 = vld [vmem:[#allocation11 + $0x18] sm:$0xff]  }
  0x59   :  { %671 = vmatmul.mubr.msk.bf16.vlgmr.msra.gmra.mxu1 %vm146_vm1, %v134_v3  ;;  %v767_v20 = vld [vmem:[#allocation11 + $0x10] sm:$0xff]   ;;  %v609_v25 = vld [vmem:[%s1113_s4] ss:$0 sm:$0xff]  ;;  %v768_v34 = vld [vmem:[#allocation11 + $0x8] sm:$0xff]  }
  0x5a   :  { %675 = vmatpush3.bf16.msra.mxu1 %v753_v4  ;;  %676 = vmatprep.mubr.msk.bf16.mxu1 %vm958_vm0, %v957_v0  ;;  %v769_v35 = vld [vmem:[#allocation11] sm:$0xff]   ;;  %v770_v36 = vld [vmem:[#allocation13 + $0x38] sm:$0xff]   ;;  %v771_v37 = vld [vmem:[#allocation13 + $0x30] sm:$0xff]  }
  0x5b   :  { %700 = vmatprep.subr.bf16.mxu1 %v957_v0  ;;  %683 = vmatpush3.bf16.msra.mxu0 %v755_v6  ;;  %v772_v38 = vld [vmem:[#allocation13 + $0x28] sm:$0xff]   ;;  %v773_v39 = vld [vmem:[#allocation13 + $0x20] sm:$0xff]   ;;  %v774_v40 = vld [vmem:[#allocation13 + $0x18] sm:$0xff]  }
  0x5c   :  { %684 = vmatprep.subr.bf16.mxu0 %v957_v0  ;;  %v775_v41 = vld [vmem:[#allocation13 + $0x10] sm:$0xff]   ;;  %v610_v42 = vld [vmem:[%s1115_s6] ss:$0 sm:$0xff]  ;;  %v776_v50 = vld [vmem:[#allocation13 + $0x8] sm:$0xff]  }
  0x5d   :  { %v777_v51 = vld [vmem:[#allocation13] sm:$0xff]  }
  0x5e   :  { %v619_v52 = vld [vmem:[%s1117_s8] ss:$0 sm:$0xff]  ;;  %s918_s8 = scalar_lea.vmem %s594_s15, 64 }
  0x5f   :  { %685 = vmatpush3.bf16.msra.mxu0 %v756_v8  ;;  %v628_v60 = vld [vmem:[%s1119_s10] ss:$0 sm:$0xff]  ;;  %p919_p7 = scmp.ne.s32.totalorder %s594_s15, %s918_s8  ;;  %p924_p9 = scmp.lt.s32.totalorder %s918_s8, %s918_s8 }
  0x60   :  { %686 = vmatprep.subr.bf16.mxu0 %v957_v0 }
  0x61   :  { %677 = vmatmul.mubr.msk.bf16.vlgmr.msra.gmra.mxu1 %vm146_vm1, %v132_v9  ;;  %p925_p10 = por %p924_p9, %p923_p8 }
  0x62   :  { %716 = vmatprep.mubr.msk.bf16.mxu1 %vm958_vm0, %v957_v0  ;;  %701 = vmatpush3.bf16.msra.mxu1 %v762_v15 }
  0x63   :  { %687 = vmatpush3.bf16.msra.mxu0 %v757_v10  ;;  %702 = vmatprep.subr.bf16.mxu1 %v957_v0  ;;  %p926_p11 = pnand %p925_p10, %p919_p7 }
  0x64   :  { %688 = vmatprep.subr.bf16.mxu0 %v957_v0 }
  0x66   :  { %703 = vmatpush3.bf16.msra.mxu1 %v763_v16 }
  0x67   :  { %689 = vmatpush3.bf16.msra.mxu0 %v758_v11  ;;  %704 = vmatprep.subr.bf16.mxu1 %v957_v0 }
  0x68   :  { %690 = vmatprep.subr.bf16.mxu0 %v957_v0 }
  0x6a   :  { %705 = vmatpush3.bf16.msra.mxu1 %v764_v17 }
  0x6b   :  { %691 = vmatpush3.bf16.msra.mxu0 %v759_v12  ;;  %706 = vmatprep.subr.bf16.mxu1 %v957_v0 }
  0x6c   :  { %692 = vmatprep.subr.bf16.mxu0 %v957_v0 }
  0x6e   :  { %707 = vmatpush3.bf16.msra.mxu1 %v765_v18 }
  0x6f   :  { %693 = vmatpush3.bf16.msra.mxu0 %v760_v13  ;;  %708 = vmatprep.subr.bf16.mxu1 %v957_v0 }
  0x70   :  { %694 = vmatprep.subr.bf16.mxu0 %v957_v0 }
  0x72   :  { %709 = vmatpush3.bf16.msra.mxu1 %v766_v19 }
  0x73   :  { %695 = vmatpush3.bf16.msra.mxu0 %v761_v14  ;;  %710 = vmatprep.subr.bf16.mxu1 %v957_v0 }
  0x74   :  { %720 = vmatprep.subr.bf16.mxu0 %v957_v0 }
  0x76   :  { %711 = vmatpush3.bf16.msra.mxu1 %v767_v20 }
  0x77   :  { %712 = vmatprep.subr.bf16.mxu1 %v957_v0 }
  0x7a   :  { %713 = vmatpush3.bf16.msra.mxu1 %v768_v34 }
  0x7b   :  { %714 = vmatprep.subr.bf16.mxu1 %v957_v0 }
  0x7e   :  { %715 = vmatpush3.bf16.msra.mxu1 %v769_v35 }
 0x119   :  { %v184_v21 = vpop.f32.mrf.mxu1 }
 0x11b   :  { %v672_v22 = vpop.f32.mrf.mxu1 }
 0x11d   :  { %v187_v23 = vpop.f32.mrf.mxu1 }
 0x11f   :  { %v673_v24 = vpop.f32.mrf.mxu1 }
 0x121   :  { %v233_v26 = vpop.f32.mrf.mxu1 }
 0x122   :  { %v234_v27 = vadd.f32 %v233_v26, %v184_v21 }
 0x123   :  { %v678_v28 = vpop.f32.mrf.mxu1 }
 0x124   :  { %v245_v29 = vadd.f32 %v609_v25, %v234_v27 }
 0x125   :  { %v236_v30 = vpop.f32.mrf.mxu1 }
 0x126   :  { %v246_v31 = vmax.f32 %v245_v29, 0.0 }
 0x127   :  { %v679_v32 = vpop.f32.mrf.mxu1 }
 0x128   :  { %v264_v33 = vpack.c.bf16 %v246_v31, %v246_v31 }
 0x12a   :  { %697 = vmatmul.mubr.bf16.vlgmr.msra.gmra.mxu0 %v264_v33 }
 0x12b   :  { %736 = vmatprep.mubr.msk.bf16.mxu0 %vm958_vm0, %v957_v0  ;;  %721 = vmatpush3.bf16.msra.mxu0 %v770_v36 }
 0x12c   :  { %722 = vmatprep.subr.bf16.mxu0 %v957_v0 }
 0x12f   :  { %723 = vmatpush3.bf16.msra.mxu0 %v771_v37 }
 0x130   :  { %724 = vmatprep.subr.bf16.mxu0 %v957_v0 }
 0x133   :  { %725 = vmatpush3.bf16.msra.mxu0 %v772_v38 }
 0x134   :  { %726 = vmatprep.subr.bf16.mxu0 %v957_v0 }
 0x137   :  { %727 = vmatpush3.bf16.msra.mxu0 %v773_v39 }
 0x138   :  { %728 = vmatprep.subr.bf16.mxu0 %v957_v0 }
 0x13b   :  { %729 = vmatpush3.bf16.msra.mxu0 %v774_v40 }
 0x13c   :  { %730 = vmatprep.subr.bf16.mxu0 %v957_v0 }
 0x13f   :  { %731 = vmatpush3.bf16.msra.mxu0 %v775_v41 }
 0x140   :  { %732 = vmatprep.subr.bf16.mxu0 %v957_v0 }
 0x143   :  { %733 = vmatpush3.bf16.msra.mxu0 %v776_v50 }
 0x144   :  { %734 = vmatprep.subr.bf16.mxu0 %v957_v0 }
 0x147   :  { %735 = vmatpush3.bf16.msra.mxu0 %v777_v51 }
 0x1ea   :  { %v353_v43 = vpop.f32.mrf.mxu0 }
 0x1eb   :  { %v354_v44 = vadd.f32 %v610_v42, %v353_v43 }
 0x1ec   :  { %v698_v45 = vpop.f32.mrf.mxu0 }
 0x1ed   :  { %v359_v46 = vmax.f32 %v354_v44, 0.0 }
 0x1ee   :  { %v356_v47 = vpop.f32.mrf.mxu0 }
 0x1ef   :  { %v377_v48 = vpack.c.bf16 %v359_v46, %v359_v46 }
 0x1f0   :  { %v699_v49 = vpop.f32.mrf.mxu0 }
 0x1f1   :  { %717 = vmatmul.mubr.bf16.vlgmr.msra.gmra.mxu1 %v377_v48 }
 0x2b1   :  { %v466_v53 = vpop.f32.mrf.mxu1 }
 0x2b2   :  { %v467_v54 = vadd.f32 %v619_v52, %v466_v53 }
 0x2b3   :  { %v718_v55 = vpop.f32.mrf.mxu1 }
 0x2b4   :  { %v472_v56 = vmax.f32 %v467_v54, 0.0 }
 0x2b5   :  { %v469_v57 = vpop.f32.mrf.mxu1 }
 0x2b6   :  { %v490_v58 = vpack.c.bf16 %v472_v56, %v472_v56 }
 0x2b7   :  { %v719_v59 = vpop.f32.mrf.mxu1 }
 0x2b8   :  { %737 = vmatmul.mubr.bf16.vlgmr.msra.gmra.mxu0 %v490_v58 }
 0x378   :  { %v579_v61 = vpop.f32.mrf.mxu0 }
 0x379   :  { %v580_v62 = vadd.f32 %v628_v60, %v579_v61 }
 0x37a   :  { %v738_v63 = vpop.f32.mrf.mxu0 }
 0x37b   :  { %v585_v0 = vpack.c.bf16 %v580_v62, %v580_v62 }
 0x37c   :  { %v582_v1 = vpop.f32.mrf.mxu0 }
 0x37d   :  { %586 = vst [vmem:[#allocation14] sm:$0xf] %v585_v0 }
 0x37e   :  { %v739_v2 = vpop.f32.mrf.mxu0 }
 0x37f   :  { %929 = shalt.err (!%p926_p11)
}
 0x380   :  { %596 = dma.vmem_to_hbm [thread:$0]  %s594_s15, 64, %s1120_s11, [#allocation4]  }
 0x381   :  { %946 = dma.done.wait [#allocation4], 64  }
 0x382   :  { %947 = vsyncadd [#allocation4], 4294967232 }
 0x383   :  { %600 = vsyncpa [#allocation3], 1 }
 0x384   :  { %601 = vsyncpa [#allocation6], 1 }
 0x385   :  { %602 = vsyncpa [#allocation9], 1 }
 0x386   :  { %603 = vsyncpa [#allocation12], 1 }
 0x387   :  { %604 = vsyncpa [#allocation4], 1 }

// kernel: tpu_custom_call.1
= control target key start
LH: loop header
LB: loop body
LE: loop exit
PB: predicated region body
PF: predicated region fallthrough
CT: control target
= control target key end

     0   :  { %16 = vsyncpa [#allocation3], 0  ;;  %s1109_s0 = inlined_call_operand.hbm [shape: f32[8,16], index: 0, kind: input, shape index: {}]   ;;  %s1110_s1 = inlined_call_operand.hbm [shape: f32[8,16], index: 1, kind: input, shape index: {}]   ;;  %s1111_s2 = inlined_call_operand.hbm [shape: bf16[16,128], index: 2, kind: input, shape index: {}]   ;;  %s1112_s3 = inlined_call_operand.hbm [shape: bf16[16,128], index: 3, kind: input, shape index: {}]   ;;  %s1113_s4 = inlined_call_operand.vmem [shape: f32[1,128], index: 4, kind: input, shape index: {}]   ;;  %s1114_s5 = inlined_call_operand.hbm [shape: bf16[128,128], index: 5, kind: input, shape index: {}]   ;;  %s1115_s6 = inlined_call_operand.vmem [shape: f32[1,128], index: 6, kind: input, shape index: {}]   ;;  %s1116_s7 = inlined_call_operand.hbm [shape: bf16[128,128], index: 7, kind: input, shape index: {}]   ;;  %s1117_s8 = inlined_call_operand.vmem [shape: f32[1,128], index: 8, kind: input, shape index: {}]   ;;  %s1118_s9 = inlined_call_operand.hbm [shape: bf16[128,128], index: 9, kind: input, shape index: {}]   ;;  %s1119_s10 = inlined_call_operand.vmem [shape: f32[1,128], index: 10, kind: input, shape index: {}]   ;;  %s1120_s11 = inlined_call_operand.hbm [shape: bf16[8,128], index: 11, kind: output, shape index: {}]  }
   0x1   :  { %17 = vsyncpa [#allocation6], 0 }
   0x2   :  { %18 = vsyncpa [#allocation9], 0 }
   0x3   :  { %19 = vsyncpa [#allocation12], 0 }
   0x4   :  { %20 = vsyncpa [#allocation4], 0  ;;  %s948_s17 = smov [#allocation5]  }
   0x5   :  { %s37_s18 = sshll.u32 %s948_s17, 4  ;;  %s38_s18 = int_to_ptr.vmem [resolvable:$true] %s37_s18 }
   0x6   :  { %s786_s19 = scalar_lea.vmem %s38_s18, 128  ;;  %p791_p1 = scmp.lt.s32.totalorder %s38_s18, %s38_s18 }
   0x7   :  { %p787_p0 = scmp.ne.s32.totalorder %s38_s18, %s786_s19  ;;  %p792_p2 = scmp.lt.s32.totalorder %s786_s19, %s786_s19 }
   0x9   :  { %p793_p3 = por %p792_p2, %p791_p1 }
   0xb   :  { %p794_p4 = pnand %p793_p3, %p787_p0 }
   0xd   :  { %797 = shalt.err (!%p794_p4)
}
   0xe   :  { %40 = dma.hbm_to_vmem [thread:$0]  %s1110_s1, 128, %s38_s18, [#allocation6]  }
   0xf   :  { %s949_s22 = smov [#allocation8]   ;;  %s950_s24 = smov [#allocation11]  }
  0x10   :  { %s58_s23 = sshll.u32 %s949_s22, 4  ;;  %s86_s25 = sshll.u32 %s950_s24, 4  ;;  %s59_s23 = int_to_ptr.vmem [resolvable:$true] %s58_s23  ;;  %s87_s25 = int_to_ptr.vmem [resolvable:$true] %s86_s25 }
  0x11   :  { %s806_s26 = scalar_lea.vmem %s59_s23, 128  ;;  %p811_p6 = scmp.lt.s32.totalorder %s59_s23, %s59_s23 }
  0x12   :  { %p807_p5 = scmp.ne.s32.totalorder %s59_s23, %s806_s26  ;;  %p812_p7 = scmp.lt.s32.totalorder %s806_s26, %s806_s26 }
  0x14   :  { %p813_p8 = por %p812_p7, %p811_p6 }
  0x16   :  { %p814_p9 = pnand %p813_p8, %p807_p5 }
  0x18   :  { %817 = shalt.err (!%p814_p9)
}
  0x19   :  { %s951_s27 = smov 64   ;;  %s952_s28 = smov 4  }
  0x1a   :  { %64 = dma.hbm_to_vmem [thread:$0]  %s1112_s3, 128, %s59_s23, [#allocation9], %s951_s27, %s951_s27, %s952_s28  }
  0x1b   :  { %s826_s1 = scalar_lea.vmem %s87_s25, 1024  ;;  %p831_p11 = scmp.lt.s32.totalorder %s87_s25, %s87_s25 }
  0x1c   :  { %p827_p10 = scmp.ne.s32.totalorder %s87_s25, %s826_s1  ;;  %p832_p12 = scmp.lt.s32.totalorder %s826_s1, %s826_s1 }
  0x1e   :  { %p833_p13 = por %p832_p12, %p831_p11 }
  0x20   :  { %p834_p0 = pnand %p833_p13, %p827_p10 }
  0x22   :  { %837 = shalt.err (!%p834_p0)
}
  0x23   :  { %92 = dma.hbm_to_vmem [thread:$0]  %s1116_s7, 1024, %s87_s25, [#allocation12], %s951_s27, %s951_s27, %s952_s28  }
  0x24   :  { %s953_s14 = smov [#allocation2]   ;;  %s954_s16 = smov [#allocation7]  }
  0x25   :  { %s27_s15 = sshll.u32 %s953_s14, 4  ;;  %s46_s3 = sshll.u32 %s954_s16, 4  ;;  %s28_s15 = int_to_ptr.vmem [resolvable:$true] %s27_s15  ;;  %s47_s3 = int_to_ptr.vmem [resolvable:$true] %s46_s3 }
  0x26   :  { %s846_s17 = scalar_lea.vmem %s28_s15, 128  ;;  %p851_p2 = scmp.lt.s32.totalorder %s28_s15, %s28_s15 }
  0x27   :  { %p847_p1 = scmp.ne.s32.totalorder %s28_s15, %s846_s17  ;;  %p852_p3 = scmp.lt.s32.totalorder %s846_s17, %s846_s17 }
  0x29   :  { %p853_p4 = por %p852_p3, %p851_p2 }
  0x2b   :  { %p854_p5 = pnand %p853_p4, %p847_p1 }
  0x2d   :  { %857 = shalt.err (!%p854_p5)
}
  0x2e   :  { %30 = dma.hbm_to_vmem [thread:$0]  %s1109_s0, 128, %s28_s15, [#allocation3]  }
  0x2f   :  { %s866_s20 = scalar_lea.vmem %s47_s3, 128  ;;  %p871_p7 = scmp.lt.s32.totalorder %s47_s3, %s47_s3 }
  0x30   :  { %p867_p6 = scmp.ne.s32.totalorder %s47_s3, %s866_s20  ;;  %p872_p8 = scmp.lt.s32.totalorder %s866_s20, %s866_s20 }
  0x32   :  { %p873_p9 = por %p872_p8, %p871_p7 }
  0x34   :  { %p874_p10 = pnand %p873_p9, %p867_p6 }
  0x36   :  { %877 = shalt.err (!%p874_p10)
}
  0x37   :  { %52 = dma.hbm_to_vmem [thread:$0]  %s1111_s2, 128, %s47_s3, [#allocation6], %s951_s27, %s951_s27, %s952_s28  }
  0x38   :  { %s955_s22 = smov [#allocation10]   ;;  %s956_s24 = smov [#allocation13]  }
  0x39   :  { %s72_s23 = sshll.u32 %s955_s22, 4  ;;  %s100_s0 = sshll.u32 %s956_s24, 4  ;;  %s73_s23 = int_to_ptr.vmem [resolvable:$true] %s72_s23  ;;  %s101_s0 = int_to_ptr.vmem [resolvable:$true] %s100_s0 }
  0x3a   :  { %s886_s25 = scalar_lea.vmem %s73_s23, 1024  ;;  %p891_p12 = scmp.lt.s32.totalorder %s73_s23, %s73_s23 }
  0x3b   :  { %p887_p11 = scmp.ne.s32.totalorder %s73_s23, %s886_s25  ;;  %p892_p13 = scmp.lt.s32.totalorder %s886_s25, %s886_s25 }
  0x3d   :  { %p893_p0 = por %p892_p13, %p891_p12 }
  0x3f   :  { %p894_p1 = pnand %p893_p0, %p887_p11 }
  0x41   :  { %897 = shalt.err (!%p894_p1)
}
  0x42   :  { %78 = dma.hbm_to_vmem [thread:$0]  %s1114_s5, 1024, %s73_s23, [#allocation9], %s951_s27, %s951_s27, %s952_s28  }
  0x43   :  { %s906_s2 = scalar_lea.vmem %s101_s0, 1024  ;;  %p911_p3 = scmp.lt.s32.totalorder %s101_s0, %s101_s0 }
  0x44   :  { %p907_p2 = scmp.ne.s32.totalorder %s101_s0, %s906_s2  ;;  %p912_p4 = scmp.lt.s32.totalorder %s906_s2, %s906_s2 }
  0x46   :  { %p913_p5 = por %p912_p4, %p911_p3 }
  0x48   :  { %p914_p6 = pnand %p913_p5, %p907_p2 }
  0x4a   :  { %917 = shalt.err (!%p914_p6)
}
  0x4b   :  { %106 = dma.hbm_to_vmem [thread:$0]  %s1118_s9, 1024, %s101_s0, [#allocation12], %s951_s27, %s951_s27, %s952_s28  }
  0x4c   :  { %938 = dma.done.wait [#allocation3], 128  }
  0x4d   :  { %939 = vsyncadd [#allocation3], 4294967168 }
  0x4e   :  { %940 = dma.done.wait [#allocation6], 256  }
  0x4f   :  { %941 = vsyncadd [#allocation6], 4294967040 }
  0x50   :  { %942 = dma.done.wait [#allocation9], 1152  }
  0x51   :  { %943 = vsyncadd [#allocation9], 4294966144 }
  0x52   :  { %944 = dma.done.wait [#allocation12], 2048  }
  0x53   :  { %945 = vsyncadd [#allocation12], 4294965248  ;;  %v957_v0 = vmov 0.0   ;;  %vm958_vm0 = vmmov 0   ;;  %v752_v1 = vld [vmem:[#allocation8] sm:$0xff]   ;;  %v133_v2 = vld [vmem:[#allocation5] sm:$0xff] }
  0x54   :  { %668 = vmatprep.subr.bf16.mxu1 %v957_v0  ;;  %670 = vmatprep.mubr.msk.bf16.mxu1 %vm958_vm0, %v957_v0  ;;  %v134_v3 = vpack.c.bf16 %v133_v2, %v133_v2  ;;  %vm146_vm1 = vcmask 130048   ;;  %v753_v4 = vld [vmem:[#allocation7] sm:$0xff]   ;;  %v754_v5 = vld [vmem:[#allocation10 + $0x38] sm:$0xff]   ;;  %v131_v7 = vld [vmem:[#allocation2] sm:$0xff]  ;;  %s959_s14 = smov [#allocation14]  }
  0x55   :  { %680 = vmatprep.subr.bf16.mxu0 %v957_v0  ;;  %696 = vmatprep.mubr.msk.bf16.mxu0 %vm958_vm0, %v957_v0  ;;  %v755_v6 = vld [vmem:[#allocation10 + $0x30] sm:$0xff]   ;;  %v756_v8 = vld [vmem:[#allocation10 + $0x28] sm:$0xff]   ;;  %v132_v9 = vpack.c.bf16 %v131_v7, %v131_v7  ;;  %v757_v10 = vld [vmem:[#allocation10 + $0x20] sm:$0xff]   ;;  %s593_s15 = sshll.u32 %s959_s14, 4  ;;  %s594_s15 = int_to_ptr.vmem [resolvable:$true] %s593_s15 }
  0x56   :  { %669 = vmatpush3.bf16.msra.mxu1 %v752_v1  ;;  %681 = vmatpush3.bf16.msra.mxu0 %v754_v5  ;;  %v758_v11 = vld [vmem:[#allocation10 + $0x18] sm:$0xff]   ;;  %v759_v12 = vld [vmem:[#allocation10 + $0x10] sm:$0xff]   ;;  %v760_v13 = vld [vmem:[#allocation10 + $0x8] sm:$0xff]   ;;  %p923_p8 = scmp.lt.s32.totalorder %s594_s15, %s594_s15 }
  0x57   :  { %674 = vmatprep.subr.bf16.mxu1 %v957_v0  ;;  %682 = vmatprep.subr.bf16.mxu0 %v957_v0  ;;  %v761_v14 = vld [vmem:[#allocation10] sm:$0xff]   ;;  %v762_v15 = vld [vmem:[#allocation11 + $0x38] sm:$0xff]   ;;  %v763_v16 = vld [vmem:[#allocation11 + $0x30] sm:$0xff]  }
  0x58   :  { %v764_v17 = vld [vmem:[#allocation11 + $0x28] sm:$0xff]   ;;  %v765_v18 = vld [vmem:[#allocation11 + $0x20] sm:$0xff]   ;;  %v766_v19 = vld [vmem:[#allocation11 + $0x18] sm:$0xff]  }
  0x59   :  { %671 = vmatmul.mubr.msk.bf16.vlgmr.msra.gmra.mxu1 %vm146_vm1, %v134_v3  ;;  %v767_v20 = vld [vmem:[#allocation11 + $0x10] sm:$0xff]   ;;  %v609_v25 = vld [vmem:[%s1113_s4] ss:$0 sm:$0xff]  ;;  %v768_v34 = vld [vmem:[#allocation11 + $0x8] sm:$0xff]  }
  0x5a   :  { %675 = vmatpush3.bf16.msra.mxu1 %v753_v4  ;;  %676 = vmatprep.mubr.msk.bf16.mxu1 %vm958_vm0, %v957_v0  ;;  %v769_v35 = vld [vmem:[#allocation11] sm:$0xff]   ;;  %v770_v36 = vld [vmem:[#allocation13 + $0x38] sm:$0xff]   ;;  %v771_v37 = vld [vmem:[#allocation13 + $0x30] sm:$0xff]  }
  0x5b   :  { %700 = vmatprep.subr.bf16.mxu1 %v957_v0  ;;  %683 = vmatpush3.bf16.msra.mxu0 %v755_v6  ;;  %v772_v38 = vld [vmem:[#allocation13 + $0x28] sm:$0xff]   ;;  %v773_v39 = vld [vmem:[#allocation13 + $0x20] sm:$0xff]   ;;  %v774_v40 = vld [vmem:[#allocation13 + $0x18] sm:$0xff]  }
  0x5c   :  { %684 = vmatprep.subr.bf16.mxu0 %v957_v0  ;;  %v775_v41 = vld [vmem:[#allocation13 + $0x10] sm:$0xff]   ;;  %v610_v42 = vld [vmem:[%s1115_s6] ss:$0 sm:$0xff]  ;;  %v776_v50 = vld [vmem:[#allocation13 + $0x8] sm:$0xff]  }
  0x5d   :  { %v777_v51 = vld [vmem:[#allocation13] sm:$0xff]  }
  0x5e   :  { %v619_v52 = vld [vmem:[%s1117_s8] ss:$0 sm:$0xff]  ;;  %s918_s8 = scalar_lea.vmem %s594_s15, 64 }
  0x5f   :  { %685 = vmatpush3.bf16.msra.mxu0 %v756_v8  ;;  %v628_v60 = vld [vmem:[%s1119_s10] ss:$0 sm:$0xff]  ;;  %p919_p7 = scmp.ne.s32.totalorder %s594_s15, %s918_s8  ;;  %p924_p9 = scmp.lt.s32.totalorder %s918_s8, %s918_s8 }
  0x60   :  { %686 = vmatprep.subr.bf16.mxu0 %v957_v0 }
  0x61   :  { %677 = vmatmul.mubr.msk.bf16.vlgmr.msra.gmra.mxu1 %vm146_vm1, %v132_v9  ;;  %p925_p10 = por %p924_p9, %p923_p8 }
  0x62   :  { %716 = vmatprep.mubr.msk.bf16.mxu1 %vm958_vm0, %v957_v0  ;;  %701 = vmatpush3.bf16.msra.mxu1 %v762_v15 }
  0x63   :  { %687 = vmatpush3.bf16.msra.mxu0 %v757_v10  ;;  %702 = vmatprep.subr.bf16.mxu1 %v957_v0  ;;  %p926_p11 = pnand %p925_p10, %p919_p7 }
  0x64   :  { %688 = vmatprep.subr.bf16.mxu0 %v957_v0 }
  0x66   :  { %703 = vmatpush3.bf16.msra.mxu1 %v763_v16 }
  0x67   :  { %689 = vmatpush3.bf16.msra.mxu0 %v758_v11  ;;  %704 = vmatprep.subr.bf16.mxu1 %v957_v0 }
  0x68   :  { %690 = vmatprep.subr.bf16.mxu0 %v957_v0 }
  0x6a   :  { %705 = vmatpush3.bf16.msra.mxu1 %v764_v17 }
  0x6b   :  { %691 = vmatpush3.bf16.msra.mxu0 %v759_v12  ;;  %706 = vmatprep.subr.bf16.mxu1 %v957_v0 }
  0x6c   :  { %692 = vmatprep.subr.bf16.mxu0 %v957_v0 }
  0x6e   :  { %707 = vmatpush3.bf16.msra.mxu1 %v765_v18 }
  0x6f   :  { %693 = vmatpush3.bf16.msra.mxu0 %v760_v13  ;;  %708 = vmatprep.subr.bf16.mxu1 %v957_v0 }
  0x70   :  { %694 = vmatprep.subr.bf16.mxu0 %v957_v0 }
  0x72   :  { %709 = vmatpush3.bf16.msra.mxu1 %v766_v19 }
  0x73   :  { %695 = vmatpush3.bf16.msra.mxu0 %v761_v14  ;;  %710 = vmatprep.subr.bf16.mxu1 %v957_v0 }
  0x74   :  { %720 = vmatprep.subr.bf16.mxu0 %v957_v0 }
  0x76   :  { %711 = vmatpush3.bf16.msra.mxu1 %v767_v20 }
  0x77   :  { %712 = vmatprep.subr.bf16.mxu1 %v957_v0 }
  0x7a   :  { %713 = vmatpush3.bf16.msra.mxu1 %v768_v34 }
  0x7b   :  { %714 = vmatprep.subr.bf16.mxu1 %v957_v0 }
  0x7e   :  { %715 = vmatpush3.bf16.msra.mxu1 %v769_v35 }
 0x119   :  { %v184_v21 = vpop.f32.mrf.mxu1 }
 0x11b   :  { %v672_v22 = vpop.f32.mrf.mxu1 }
 0x11d   :  { %v187_v23 = vpop.f32.mrf.mxu1 }
 0x11f   :  { %v673_v24 = vpop.f32.mrf.mxu1 }
 0x121   :  { %v233_v26 = vpop.f32.mrf.mxu1 }
 0x122   :  { %v234_v27 = vadd.f32 %v233_v26, %v184_v21 }
 0x123   :  { %v678_v28 = vpop.f32.mrf.mxu1 }
 0x124   :  { %v245_v29 = vadd.f32 %v609_v25, %v234_v27 }
 0x125   :  { %v236_v30 = vpop.f32.mrf.mxu1 }
 0x126   :  { %v246_v31 = vmax.f32 %v245_v29, 0.0 }
 0x127   :  { %v679_v32 = vpop.f32.mrf.mxu1 }
 0x128   :  { %v264_v33 = vpack.c.bf16 %v246_v31, %v246_v31 }
 0x12a   :  { %697 = vmatmul.mubr.bf16.vlgmr.msra.gmra.mxu0 %v264_v33 }
 0x12b   :  { %736 = vmatprep.mubr.msk.bf16.mxu0 %vm958_vm0, %v957_v0  ;;  %721 = vmatpush3.bf16.msra.mxu0 %v770_v36 }
 0x12c   :  { %722 = vmatprep.subr.bf16.mxu0 %v957_v0 }
 0x12f   :  { %723 = vmatpush3.bf16.msra.mxu0 %v771_v37 }
 0x130   :  { %724 = vmatprep.subr.bf16.mxu0 %v957_v0 }
 0x133   :  { %725 = vmatpush3.bf16.msra.mxu0 %v772_v38 }
 0x134   :  { %726 = vmatprep.subr.bf16.mxu0 %v957_v0 }
 0x137   :  { %727 = vmatpush3.bf16.msra.mxu0 %v773_v39 }
 0x138   :  { %728 = vmatprep.subr.bf16.mxu0 %v957_v0 }
 0x13b   :  { %729 = vmatpush3.bf16.msra.mxu0 %v774_v40 }
 0x13c   :  { %730 = vmatprep.subr.bf16.mxu0 %v957_v0 }
 0x13f   :  { %731 = vmatpush3.bf16.msra.mxu0 %v775_v41 }
 0x140   :  { %732 = vmatprep.subr.bf16.mxu0 %v957_v0 }
 0x143   :  { %733 = vmatpush3.bf16.msra.mxu0 %v776_v50 }
 0x144   :  { %734 = vmatprep.subr.bf16.mxu0 %v957_v0 }
 0x147   :  { %735 = vmatpush3.bf16.msra.mxu0 %v777_v51 }
 0x1ea   :  { %v353_v43 = vpop.f32.mrf.mxu0 }
 0x1eb   :  { %v354_v44 = vadd.f32 %v610_v42, %v353_v43 }
 0x1ec   :  { %v698_v45 = vpop.f32.mrf.mxu0 }
 0x1ed   :  { %v359_v46 = vmax.f32 %v354_v44, 0.0 }
 0x1ee   :  { %v356_v47 = vpop.f32.mrf.mxu0 }
 0x1ef   :  { %v377_v48 = vpack.c.bf16 %v359_v46, %v359_v46 }
 0x1f0   :  { %v699_v49 = vpop.f32.mrf.mxu0 }
 0x1f1   :  { %717 = vmatmul.mubr.bf16.vlgmr.msra.gmra.mxu1 %v377_v48 }
 0x2b1   :  { %v466_v53 = vpop.f32.mrf.mxu1 }
 0x2b2   :  { %v467_v54 = vadd.f32 %v619_v52, %v466_v53 }
 0x2b3   :  { %v718_v55 = vpop.f32.mrf.mxu1 }
 0x2b4   :  { %v472_v56 = vmax.f32 %v467_v54, 0.0 }
 0x2b5   :  { %v469_v57 = vpop.f32.mrf.mxu1 }
 0x2b6   :  { %v490_v58 = vpack.c.bf16 %v472_v56, %v472_v56 }
 0x2b7   :  { %v719_v59 = vpop.f32.mrf.mxu1 }
 0x2b8   :  { %737 = vmatmul.mubr.bf16.vlgmr.msra.gmra.mxu0 %v490_v58 }
 0x378   :  { %v579_v61 = vpop.f32.mrf.mxu0 }
 0x379   :  { %v580_v62 = vadd.f32 %v628_v60, %v579_v61 }
 0x37a   :  { %v738_v63 = vpop.f32.mrf.mxu0 }
 0x37b   :  { %v585_v0 = vpack.c.bf16 %v580_v62, %v580_v62 }
 0x37c   :  { %v582_v1 = vpop.f32.mrf.mxu0 }
 0x37d   :  { %586 = vst [vmem:[#allocation14] sm:$0xf] %v585_v0 }
 0x37e   :  { %v739_v2 = vpop.f32.mrf.mxu0 }
 0x37f   :  { %929 = shalt.err (!%p926_p11)
}
 0x380   :  { %596 = dma.vmem_to_hbm [thread:$0]  %s594_s15, 64, %s1120_s11, [#allocation4]  }
 0x381   :  { %946 = dma.done.wait [#allocation4], 64  }
 0x382   :  { %947 = vsyncadd [#allocation4], 4294967232 }
 0x383   :  { %600 = vsyncpa [#allocation3], 1 }
 0x384   :  { %601 = vsyncpa [#allocation6], 1 }
 0x385   :  { %602 = vsyncpa [#allocation9], 1 }
 0x386   :  { %603 = vsyncpa [#allocation12], 1 }
 0x387   :  { %604 = vsyncpa [#allocation4], 1 }

</bundles_post_ra>
